<compile_context>
chip_gen: v5e
topology: v5e:2x2
jax: 0.10.0
libtpu: 0.0.40
codegen_flags: <defaults>
</compile_context>

<pallas_src>
import math

import jax
import jax.numpy as jnp
from jax.experimental import pallas as pl
from jax.experimental.pallas import tpu as pltpu

# ---- configuration (small synthetic shapes consistent with the module) ----
B = 2                      # batch
C = 3                      # RGB channels
H = W = 16                 # spatial
PATCH = 8                  # patch_size
WINDOW_SIZE = None         # -> min_resolution_step == PATCH
P = (H // PATCH) * (W // PATCH)   # 4 patches
K = C * PATCH * PATCH             # 192  (patch dim)
D = 32                            # embed dim
NUM_HEADS = 2
HD = D // NUM_HEADS               # 16
DM = 4 * D                        # 128  MLP hidden
N = P + 1                         # 5 real tokens (cls + patches)
N_PAD = 8                         # sublane-aligned token count per batch
EPS = 1e-6
SCALE = 1.0 / math.sqrt(HD)

WA_COLS = 3 * D + D + DM          # 256: [w_qkv | w_proj | w1]
WB_ROWS = K + DM                  # 320: [w_embed ; w2]

# packed row-vector slab layout (f32, lane width 128, payload starts at lane 0)
# rows 0..N_PAD-1 : tok_base (row0 = cls+pos0; rows 1..P = pos[i]+b_embed; rest 0)
R_KMASK = N_PAD            # key mask: 0 for valid keys, -1e30 for padded   width N_PAD
R_BQKV  = N_PAD + 1        # qkv bias (softmax scale folded into q part)    width 3D
R_BPROJ = N_PAD + 2        # attn proj bias                                 width D
R_B1    = N_PAD + 3        # mlp fc1 bias                                   width DM
R_B2    = N_PAD + 4        # mlp fc2 bias                                   width D
R_LN1G, R_LN1B = N_PAD + 5, N_PAD + 6
R_LN2G, R_LN2B = N_PAD + 7, N_PAD + 8
R_LNFG, R_LNFB = N_PAD + 9, N_PAD + 10
VEC_ROWS = 24              # 19 used, padded to a multiple of 8
VEC_W = 128


# ---------------------------------------------------------------------------
# Fused kernel (one grid step per batch image):
#   patch-embed (conditioner folded) -> token slab -> ViT block -> final LN
# ---------------------------------------------------------------------------
def _radio_fused_kernel(patches_ref, wA_ref, wB_ref, vecs_ref, out_ref, attn_scr):
    # ---- unpack packed operands (static slices only) ----
    w_qkv  = wA_ref[:, 0:3 * D]             # (D, 3D)  bf16, scale folded into q cols
    w_proj = wA_ref[:, 3 * D:4 * D]         # (D, D)   bf16
    w1     = wA_ref[:, 4 * D:4 * D + DM]    # (D, DM)  bf16, lane-aligned slice
    w_embed = wB_ref[0:K, :]                # (K, D)   bf16, conditioner folded in
    w2      = wB_ref[K:K + DM, :]           # (DM, D)  bf16

    tok_base = vecs_ref[0:N_PAD, 0:D]              # (N_PAD, D) f32
    kmask    = vecs_ref[R_KMASK:R_KMASK + 1, 0:N_PAD]   # (1, N_PAD) f32
    b_qkv    = vecs_ref[R_BQKV:R_BQKV + 1, 0:3 * D]
    b_proj   = vecs_ref[R_BPROJ:R_BPROJ + 1, 0:D]
    b1       = vecs_ref[R_B1:R_B1 + 1, 0:DM]
    b2       = vecs_ref[R_B2:R_B2 + 1, 0:D]
    ln1_g    = vecs_ref[R_LN1G:R_LN1G + 1, 0:D]
    ln1_b    = vecs_ref[R_LN1B:R_LN1B + 1, 0:D]
    ln2_g    = vecs_ref[R_LN2G:R_LN2G + 1, 0:D]
    ln2_b    = vecs_ref[R_LN2B:R_LN2B + 1, 0:D]
    lnf_g    = vecs_ref[R_LNFG:R_LNFG + 1, 0:D]
    lnf_b    = vecs_ref[R_LNFB:R_LNFB + 1, 0:D]

    def layernorm(v, g, beta):
        mu = jnp.mean(v, axis=-1, keepdims=True)
        var = jnp.mean(jnp.square(v - mu), axis=-1, keepdims=True)
        return (v - mu) * jax.lax.rsqrt(var + EPS) * g + beta

    def bdot(a, b):
        # bf16 MXU matmul, f32 accumulation
        return jnp.dot(a.astype(jnp.bfloat16), b.astype(jnp.bfloat16),
                       preferred_element_type=jnp.float32)

    # ---- patch embed + token assembly in one matmul + add -------------------
    # patches row 0 and rows N..N_PAD-1 are zero; cls/pos/b_embed pre-folded
    # into tok_base, so no concatenate / misaligned row writes are needed.
    x = bdot(patches_ref[...], w_embed) + tok_base                    # (N_PAD, D) f32

    # ---- ViT encoder block ---------------------------------------------------
    h = layernorm(x, ln1_g, ln1_b)
    qkv = bdot(h, w_qkv) + b_qkv                                      # (N_PAD, 3D)

    dn = (((1,), (1,)), ((), ()))      # contract last axes: q @ k^T without transpose
    for hh in range(NUM_HEADS):                                       # static, tiny
        q = qkv[:, hh * HD:(hh + 1) * HD]
        k = qkv[:, D + hh * HD:D + (hh + 1) * HD]
        v = qkv[:, 2 * D + hh * HD:2 * D + (hh + 1) * HD]
        s = jax.lax.dot_general(q.astype(jnp.bfloat16), k.astype(jnp.bfloat16),
                                dn, preferred_element_type=jnp.float32)   # (N_PAD, N_PAD)
        s = s + kmask                               # mask padded key rows (-1e30)
        s = s - jnp.max(s, axis=-1, keepdims=True)
        p = jnp.exp(s)
        p = p * pl.reciprocal(jnp.sum(p, axis=-1, keepdims=True), approx=True)
        ho = bdot(p, v)                                                # (N_PAD, HD)
        # write head output into its lane range; single proj matmul afterwards
        attn_scr[:, hh * HD:(hh + 1) * HD] = ho

    attn_out = bdot(attn_scr[...], w_proj)                             # (N_PAD, D)
    x = x + attn_out + b_proj

    h2 = layernorm(x, ln2_g, ln2_b)
    m = bdot(h2, w1) + b1
    # TODO(synk): timm ViT uses exact erf GELU; tanh-approx kept for guaranteed Mosaic lowering.
    m = jax.nn.gelu(m)
    x = x + bdot(m, w2) + b2

    # ---- final LayerNorm of forward_features ----------------------------------
    out_ref[...] = layernorm(x, lnf_g, lnf_b)


# ---------------------------------------------------------------------------
# Plain-JAX glue
# ---------------------------------------------------------------------------
def patchify(x):
    # x: (B, C, H, W) NCHW -> (B, P, K) with channel-major within-patch
    # flattening (matches torch Conv2d patch-embed weight flattening).
    # TODO(synk): the 6-D transpose stays in XLA glue; at production sizes fold
    # the patch-row extraction into the kernel via a BlockSpec index_map.
    xb = x.reshape(B, C, H // PATCH, PATCH, W // PATCH, PATCH)
    xb = xb.transpose(0, 2, 4, 1, 3, 5)        # (B, Hp, Wp, C, p, p)
    return xb.reshape(B, P, K)


def init_params(key):
    ks = jax.random.split(key, 8)
    nrm = lambda k, shape, s=0.02: jax.random.normal(k, shape, jnp.float32) * s
    ones = lambda shape: jnp.ones(shape, jnp.float32)
    zeros = lambda shape: jnp.zeros(shape, jnp.float32)
    return dict(
        cond_mean=jnp.array([0.485, 0.456, 0.406], jnp.float32),
        cond_std=jnp.array([0.229, 0.224, 0.225], jnp.float32),
        w_patch=nrm(ks[0], (K, D)), b_patch=zeros((1, D)),
        cls=nrm(ks[1], (1, 1, D)), pos=nrm(ks[2], (1, N, D)),
        ln1_g=ones((1, D)), ln1_b=zeros((1, D)),
        w_qkv=nrm(ks[3], (D, 3 * D)), b_qkv=zeros((1, 3 * D)),
        w_proj=nrm(ks[4], (D, D)), b_proj=zeros((1, D)),
        ln2_g=ones((1, D)), ln2_b=zeros((1, D)),
        w1=nrm(ks[5], (D, DM)), b1=zeros((1, DM)),
        w2=nrm(ks[6], (DM, D)), b2=zeros((1, D)),
        lnf_g=ones((1, D)), lnf_b=zeros((1, D)),
    )


def prepare_params(params):
    """One-time algebraic folds + operand packing (hoisted out of the forward)."""
    inv_std = jnp.repeat(1.0 / params["cond_std"], PATCH * PATCH)        # (K,)
    mean = jnp.repeat(params["cond_mean"], PATCH * PATCH)                # (K,)
    # Fold InputConditioner: ((x - mean) * inv_std) @ W + b == x @ W' + b'
    w_embed = inv_std[:, None] * params["w_patch"]                       # (K, D)
    b_embed = params["b_patch"] - (mean * inv_std)[None, :] @ params["w_patch"]

    # Fold the 1/sqrt(HD) softmax scale into the q part of the qkv projection.
    w_qkv = params["w_qkv"].at[:, :D].multiply(SCALE)
    b_qkv = params["b_qkv"].at[:, :D].multiply(SCALE)

    # Pack matmul weights as bf16: one D-row slab, one D-col slab.
    wA = jnp.concatenate([w_qkv, params["w_proj"], params["w1"]],
                         axis=1).astype(jnp.bfloat16)                    # (D, 256)
    wB = jnp.concatenate([w_embed, params["w2"]],
                         axis=0).astype(jnp.bfloat16)                    # (320, D)

    # Sublane-aligned token base (N_PAD rows): row 0 = cls + pos[0];
    # rows 1..P = pos[i] + patch-embed bias; padded rows = 0.
    tok_base = jnp.zeros((N_PAD, D), jnp.float32)
    tok_base = tok_base.at[0].set(params["cls"][0, 0] + params["pos"][0, 0])
    tok_base = tok_base.at[1:N].set(params["pos"][0, 1:N] + b_embed[0])

    # Key mask: padded key columns get -1e30 (softmax weight -> 0).
    kmask = jnp.where(jnp.arange(N_PAD) < N, 0.0, -1e30).astype(jnp.float32)[None, :]

    def row(v):
        v = jnp.asarray(v, jnp.float32).reshape(1, -1)
        return jnp.pad(v, ((0, 0), (0, VEC_W - v.shape[1])))

    vec_rows = [jnp.pad(tok_base, ((0, 0), (0, VEC_W - D)))]
    vec_rows += [row(v) for v in (kmask, b_qkv, params["b_proj"], params["b1"],
                                  params["b2"], params["ln1_g"], params["ln1_b"],
                                  params["ln2_g"], params["ln2_b"],
                                  params["lnf_g"], params["lnf_b"])]
    vecs = jnp.concatenate(vec_rows, axis=0)
    vecs = jnp.pad(vecs, ((0, VEC_ROWS - vecs.shape[0]), (0, 0)))        # (24, 128)
    assert vecs.shape == (VEC_ROWS, VEC_W)
    return dict(wA=wA, wB=wB, vecs=vecs)


def radio_forward(x, prepped):
    """RADIOModel.forward: returns (bb_summary.flatten(1), all_feat) as float32."""
    res_step = PATCH if WINDOW_SIZE is None else PATCH * WINDOW_SIZE
    if x.shape[-2] % res_step != 0 or x.shape[-1] % res_step != 0:
        raise ValueError(
            "The input resolution must be a multiple of `min_resolution_step`. "
            f"Input: {x.shape[-2:]}")

    # Pre-padded, sublane-aligned patch slab: row 0 (cls slot) and rows N..N_PAD-1
    # are zero, so the kernel's patch-embed matmul directly yields all N_PAD rows.
    patches = patchify(x.astype(jnp.float32)).astype(jnp.bfloat16)       # (B, P, K)
    patches_pad = jnp.zeros((B, N_PAD, K), jnp.bfloat16)
    patches_pad = patches_pad.at[:, 1:N, :].set(patches)

    grid_spec = pltpu.PrefetchScalarGridSpec(
        num_scalar_prefetch=0,
        grid=(B,),
        in_specs=[
            pl.BlockSpec((None, N_PAD, K), lambda b: (b, 0, 0)),   # per-batch rows
            pl.BlockSpec((D, WA_COLS), lambda b: (0, 0)),          # resident weights
            pl.BlockSpec((WB_ROWS, D), lambda b: (0, 0)),
            pl.BlockSpec((VEC_ROWS, VEC_W), lambda b: (0, 0)),
        ],
        out_specs=pl.BlockSpec((None, N_PAD, D), lambda b: (b, 0, 0)),
        scratch_shapes=[pltpu.VMEM((N_PAD, D), jnp.float32)],      # concat-heads scratch
    )
    y = pl.pallas_call(
        _radio_fused_kernel,
        out_shape=jax.ShapeDtypeStruct((B, N_PAD, D), jnp.float32),
        grid_spec=grid_spec,
        compiler_params=pltpu.CompilerParams(
            # batch axis is independent -> megacore-shardable on v7x
            dimension_semantics=("parallel",),
            # explicit budget; fits v5e/v6e/v7x scoped VMEM at these and larger tiles
            vmem_limit_bytes=32 * 1024 * 1024,
        ),
    )(patches_pad, prepped["wA"], prepped["wB"], prepped["vecs"])

    y = y[:, :N, :]                                          # drop padded token rows

    # VisionTransformer branch: no patch_generator, global_pool != 'avg'
    all_summary = y[:, 0]                     # (B, D)  cls token
    all_feat = y[:, 1:].astype(jnp.float32)   # (B, P, D)
    bb_summary = all_summary.reshape(B, -1).astype(jnp.float32)      # flatten(1)
    # TODO(synk): adaptors / summary_idxs gather not instantiated (empty ModuleDict, None buffer)
    return bb_summary, all_feat


if __name__ == "__main__":
    key = jax.random.PRNGKey(0)
    k_x, k_p = jax.random.split(key)
    x = jax.random.uniform(k_x, (B, C, H, W), jnp.float32)
    params = init_params(k_p)
    prepped = prepare_params(params)          # folds/packing done once, offline

    fwd = jax.jit(radio_forward)
    summary, feat = fwd(x, prepped)
    jax.block_until_ready((summary, feat))

    assert summary.shape == (B, D) and summary.dtype == jnp.float32
    assert feat.shape == (B, P, D) and feat.dtype == jnp.float32
    print("KERNEL_OK")
</pallas_src>

<mosaic_0001>
module attributes {stable_mosaic.version = 11 : i64} {
  func.func @_radio_fused_kernel(%arg0: i32, %arg1: memref<1x8x192xbf16, #tpu.memory_space<vmem>>, %arg2: memref<32x256xbf16, #tpu.memory_space<vmem>>, %arg3: memref<320x32xbf16, #tpu.memory_space<vmem>>, %arg4: memref<24x128xf32, #tpu.memory_space<vmem>>, %arg5: memref<1x8x32xf32, #tpu.memory_space<vmem>>, %arg6: memref<8x32xf32, #tpu.memory_space<vmem>>) attributes {dimension_semantics = [#tpu.dimension_semantics<parallel>], iteration_bounds = array<i64: 2>, scalar_prefetch = 0 : i64, scratch_operands = 1 : i64, tpu.core_type = #tpu.core_type<tc>, window_params = [{transform_indices = @transform_0, window_bounds = array<i64: 1, 8, 192>}, {pipeline_mode = #tpu.pipeline_mode<synchronous>, transform_indices = @transform_1, window_bounds = array<i64: 32, 256>}, {pipeline_mode = #tpu.pipeline_mode<synchronous>, transform_indices = @transform_2, window_bounds = array<i64: 320, 32>}, {pipeline_mode = #tpu.pipeline_mode<synchronous>, transform_indices = @transform_3, window_bounds = array<i64: 24, 128>}, {transform_indices = @transform_4, window_bounds = array<i64: 1, 8, 32>}]} {
    %c0 = arith.constant 0 : index
    %c0_0 = arith.constant 0 : index
    %0 = vector.load %arg2[%c0, %c0_0] : memref<32x256xbf16, #tpu.memory_space<vmem>>, vector<32x96xbf16>
    %c0_1 = arith.constant 0 : index
    %c96 = arith.constant 96 : index
    %1 = vector.load %arg2[%c0_1, %c96] : memref<32x256xbf16, #tpu.memory_space<vmem>>, vector<32x32xbf16>
    %c0_2 = arith.constant 0 : index
    %c128 = arith.constant 128 : index
    %2 = vector.load %arg2[%c0_2, %c128] : memref<32x256xbf16, #tpu.memory_space<vmem>>, vector<32x128xbf16>
    %c0_3 = arith.constant 0 : index
    %c0_4 = arith.constant 0 : index
    %3 = vector.load %arg3[%c0_3, %c0_4] : memref<320x32xbf16, #tpu.memory_space<vmem>>, vector<192x32xbf16>
    %c192 = arith.constant 192 : index
    %c0_5 = arith.constant 0 : index
    %4 = vector.load %arg3[%c192, %c0_5] : memref<320x32xbf16, #tpu.memory_space<vmem>>, vector<128x32xbf16>
    %c0_6 = arith.constant 0 : index
    %c0_7 = arith.constant 0 : index
    %5 = vector.load %arg4[%c0_6, %c0_7] : memref<24x128xf32, #tpu.memory_space<vmem>>, vector<8x32xf32>
    %c8 = arith.constant 8 : index
    %c0_8 = arith.constant 0 : index
    %6 = vector.load %arg4[%c8, %c0_8] : memref<24x128xf32, #tpu.memory_space<vmem>>, vector<1x8xf32>
    %c9 = arith.constant 9 : index
    %c0_9 = arith.constant 0 : index
    %7 = vector.load %arg4[%c9, %c0_9] : memref<24x128xf32, #tpu.memory_space<vmem>>, vector<1x96xf32>
    %c10 = arith.constant 10 : index
    %c0_10 = arith.constant 0 : index
    %8 = vector.load %arg4[%c10, %c0_10] : memref<24x128xf32, #tpu.memory_space<vmem>>, vector<1x32xf32>
    %c11 = arith.constant 11 : index
    %c0_11 = arith.constant 0 : index
    %9 = vector.load %arg4[%c11, %c0_11] : memref<24x128xf32, #tpu.memory_space<vmem>>, vector<1x128xf32>
    %c12 = arith.constant 12 : index
    %c0_12 = arith.constant 0 : index
    %10 = vector.load %arg4[%c12, %c0_12] : memref<24x128xf32, #tpu.memory_space<vmem>>, vector<1x32xf32>
    %c13 = arith.constant 13 : index
    %c0_13 = arith.constant 0 : index
    %11 = vector.load %arg4[%c13, %c0_13] : memref<24x128xf32, #tpu.memory_space<vmem>>, vector<1x32xf32>
    %c14 = arith.constant 14 : index
    %c0_14 = arith.constant 0 : index
    %12 = vector.load %arg4[%c14, %c0_14] : memref<24x128xf32, #tpu.memory_space<vmem>>, vector<1x32xf32>
    %c15 = arith.constant 15 : index
    %c0_15 = arith.constant 0 : index
    %13 = vector.load %arg4[%c15, %c0_15] : memref<24x128xf32, #tpu.memory_space<vmem>>, vector<1x32xf32>
    %c16 = arith.constant 16 : index
    %c0_16 = arith.constant 0 : index
    %14 = vector.load %arg4[%c16, %c0_16] : memref<24x128xf32, #tpu.memory_space<vmem>>, vector<1x32xf32>
    %c17 = arith.constant 17 : index
    %c0_17 = arith.constant 0 : index
    %15 = vector.load %arg4[%c17, %c0_17] : memref<24x128xf32, #tpu.memory_space<vmem>>, vector<1x32xf32>
    %c18 = arith.constant 18 : index
    %c0_18 = arith.constant 0 : index
    %16 = vector.load %arg4[%c18, %c0_18] : memref<24x128xf32, #tpu.memory_space<vmem>>, vector<1x32xf32>
    %c0_19 = arith.constant 0 : index
    %c0_20 = arith.constant 0 : index
    %c0_21 = arith.constant 0 : index
    %17 = vector.load %arg1[%c0_19, %c0_20, %c0_21] : memref<1x8x192xbf16, #tpu.memory_space<vmem>>, vector<1x8x192xbf16>
    %18 = vector.shape_cast %17 : vector<1x8x192xbf16> to vector<8x192xbf16>
    %cst = arith.constant dense<0.000000e+00> : vector<8x32xf32>
    %19 = tpu.matmul %18, %3, %cst {dimension_numbers = #tpu.dot_dimension_numbers<[1], [0], [0], [1], [0, 0, 1, 1], [], []>} : vector<8x192xbf16>, vector<192x32xbf16>, vector<8x32xf32> -> vector<8x32xf32>
    %20 = arith.addf %19, %5 : vector<8x32xf32>
    %cst_22 = arith.constant dense<0.000000e+00> : vector<8xf32>
    %21 = vector.multi_reduction <add>, %20, %cst_22 [1] : vector<8x32xf32> to vector<8xf32>
    %22 = vector.shape_cast %21 : vector<8xf32> to vector<8x1xf32>
    %cst_23 = arith.constant 3.200000e+01 : f32
    %23 = vector.broadcast %cst_23 : f32 to vector<8x1xf32>
    %24 = arith.divf %22, %23 : vector<8x1xf32>
    %25 = vector.broadcast %24 : vector<8x1xf32> to vector<8x32xf32>
    %26 = arith.subf %20, %25 : vector<8x32xf32>
    %27 = arith.mulf %26, %26 : vector<8x32xf32>
    %cst_24 = arith.constant dense<0.000000e+00> : vector<8xf32>
    %28 = vector.multi_reduction <add>, %27, %cst_24 [1] : vector<8x32xf32> to vector<8xf32>
    %29 = vector.shape_cast %28 : vector<8xf32> to vector<8x1xf32>
    %cst_25 = arith.constant 3.200000e+01 : f32
    %30 = vector.broadcast %cst_25 : f32 to vector<8x1xf32>
    %31 = arith.divf %29, %30 : vector<8x1xf32>
    %32 = vector.broadcast %24 : vector<8x1xf32> to vector<8x32xf32>
    %33 = arith.subf %20, %32 : vector<8x32xf32>
    %cst_26 = arith.constant 9.99999997E-7 : f32
    %34 = vector.broadcast %cst_26 : f32 to vector<8x1xf32>
    %35 = arith.addf %31, %34 : vector<8x1xf32>
    %36 = math.rsqrt %35 : vector<8x1xf32>
    %37 = vector.broadcast %36 : vector<8x1xf32> to vector<8x32xf32>
    %38 = arith.mulf %33, %37 : vector<8x32xf32>
    %39 = vector.broadcast %11 : vector<1x32xf32> to vector<8x32xf32>
    %40 = arith.mulf %38, %39 : vector<8x32xf32>
    %41 = vector.broadcast %12 : vector<1x32xf32> to vector<8x32xf32>
    %42 = arith.addf %40, %41 : vector<8x32xf32>
    %43 = arith.truncf %42 : vector<8x32xf32> to vector<8x32xbf16>
    %cst_27 = arith.constant dense<0.000000e+00> : vector<8x96xf32>
    %44 = tpu.matmul %43, %0, %cst_27 {dimension_numbers = #tpu.dot_dimension_numbers<[1], [0], [0], [1], [0, 0, 1, 1], [], []>} : vector<8x32xbf16>, vector<32x96xbf16>, vector<8x96xf32> -> vector<8x96xf32>
    %45 = vector.broadcast %7 : vector<1x96xf32> to vector<8x96xf32>
    %46 = arith.addf %44, %45 : vector<8x96xf32>
    %47 = vector.extract_strided_slice %46 {offsets = [0, 0], sizes = [8, 16], strides = [1, 1]} : vector<8x96xf32> to vector<8x16xf32>
    %48 = vector.extract_strided_slice %46 {offsets = [0, 32], sizes = [8, 16], strides = [1, 1]} : vector<8x96xf32> to vector<8x16xf32>
    %49 = vector.extract_strided_slice %46 {offsets = [0, 64], sizes = [8, 16], strides = [1, 1]} : vector<8x96xf32> to vector<8x16xf32>
    %50 = arith.truncf %47 : vector<8x16xf32> to vector<8x16xbf16>
    %51 = arith.truncf %48 : vector<8x16xf32> to vector<8x16xbf16>
    %cst_28 = arith.constant dense<0.000000e+00> : vector<8x8xf32>
    %52 = tpu.matmul %50, %51, %cst_28 {dimension_numbers = #tpu.dot_dimension_numbers<[1], [1], [0], [0], [0, 0, 1, 0], [], []>} : vector<8x16xbf16>, vector<8x16xbf16>, vector<8x8xf32> -> vector<8x8xf32>
    %53 = vector.broadcast %6 : vector<1x8xf32> to vector<8x8xf32>
    %54 = arith.addf %52, %53 : vector<8x8xf32>
    %cst_29 = arith.constant dense<0xFF800000> : vector<8xf32>
    %55 = vector.multi_reduction <maximumf>, %54, %cst_29 [1] : vector<8x8xf32> to vector<8xf32>
    %56 = vector.shape_cast %55 : vector<8xf32> to vector<8x1xf32>
    %57 = vector.broadcast %56 : vector<8x1xf32> to vector<8x8xf32>
    %58 = arith.subf %54, %57 : vector<8x8xf32>
    %59 = math.exp %58 : vector<8x8xf32>
    %cst_30 = arith.constant dense<0.000000e+00> : vector<8xf32>
    %60 = vector.multi_reduction <add>, %59, %cst_30 [1] : vector<8x8xf32> to vector<8xf32>
    %61 = vector.shape_cast %60 : vector<8xf32> to vector<8x1xf32>
    %62 = tpu.reciprocal %61 {approx = true} : vector<8x1xf32> -> vector<8x1xf32>
    %63 = vector.broadcast %62 : vector<8x1xf32> to vector<8x8xf32>
    %64 = arith.mulf %59, %63 : vector<8x8xf32>
    %65 = arith.truncf %64 : vector<8x8xf32> to vector<8x8xbf16>
    %66 = arith.truncf %49 : vector<8x16xf32> to vector<8x16xbf16>
    %cst_31 = arith.constant dense<0.000000e+00> : vector<8x16xf32>
    %67 = tpu.matmul %65, %66, %cst_31 {dimension_numbers = #tpu.dot_dimension_numbers<[1], [0], [0], [1], [0, 0, 1, 1], [], []>} : vector<8x8xbf16>, vector<8x16xbf16>, vector<8x16xf32> -> vector<8x16xf32>
    %c0_32 = arith.constant 0 : index
    %c0_33 = arith.constant 0 : index
    %68 = vector.load %arg6[%c0_32, %c0_33] : memref<8x32xf32, #tpu.memory_space<vmem>>, vector<8x16xf32>
    tpu.vector_store %arg6[%c0_32, %c0_33], %67 {strides = array<i32>} : memref<8x32xf32, #tpu.memory_space<vmem>>, vector<8x16xf32>,
    %69 = vector.extract_strided_slice %46 {offsets = [0, 16], sizes = [8, 16], strides = [1, 1]} : vector<8x96xf32> to vector<8x16xf32>
    %70 = vector.extract_strided_slice %46 {offsets = [0, 48], sizes = [8, 16], strides = [1, 1]} : vector<8x96xf32> to vector<8x16xf32>
    %71 = vector.extract_strided_slice %46 {offsets = [0, 80], sizes = [8, 16], strides = [1, 1]} : vector<8x96xf32> to vector<8x16xf32>
    %72 = arith.truncf %69 : vector<8x16xf32> to vector<8x16xbf16>
    %73 = arith.truncf %70 : vector<8x16xf32> to vector<8x16xbf16>
    %cst_34 = arith.constant dense<0.000000e+00> : vector<8x8xf32>
    %74 = tpu.matmul %72, %73, %cst_34 {dimension_numbers = #tpu.dot_dimension_numbers<[1], [1], [0], [0], [0, 0, 1, 0], [], []>} : vector<8x16xbf16>, vector<8x16xbf16>, vector<8x8xf32> -> vector<8x8xf32>
    %75 = vector.broadcast %6 : vector<1x8xf32> to vector<8x8xf32>
    %76 = arith.addf %74, %75 : vector<8x8xf32>
    %cst_35 = arith.constant dense<0xFF800000> : vector<8xf32>
    %77 = vector.multi_reduction <maximumf>, %76, %cst_35 [1] : vector<8x8xf32> to vector<8xf32>
    %78 = vector.shape_cast %77 : vector<8xf32> to vector<8x1xf32>
    %79 = vector.broadcast %78 : vector<8x1xf32> to vector<8x8xf32>
    %80 = arith.subf %76, %79 : vector<8x8xf32>
    %81 = math.exp %80 : vector<8x8xf32>
    %cst_36 = arith.constant dense<0.000000e+00> : vector<8xf32>
    %82 = vector.multi_reduction <add>, %81, %cst_36 [1] : vector<8x8xf32> to vector<8xf32>
    %83 = vector.shape_cast %82 : vector<8xf32> to vector<8x1xf32>
    %84 = tpu.reciprocal %83 {approx = true} : vector<8x1xf32> -> vector<8x1xf32>
    %85 = vector.broadcast %84 : vector<8x1xf32> to vector<8x8xf32>
    %86 = arith.mulf %81, %85 : vector<8x8xf32>
    %87 = arith.truncf %86 : vector<8x8xf32> to vector<8x8xbf16>
    %88 = arith.truncf %71 : vector<8x16xf32> to vector<8x16xbf16>
    %cst_37 = arith.constant dense<0.000000e+00> : vector<8x16xf32>
    %89 = tpu.matmul %87, %88, %cst_37 {dimension_numbers = #tpu.dot_dimension_numbers<[1], [0], [0], [1], [0, 0, 1, 1], [], []>} : vector<8x8xbf16>, vector<8x16xbf16>, vector<8x16xf32> -> vector<8x16xf32>
    %c0_38 = arith.constant 0 : index
    %c16_39 = arith.constant 16 : index
    %90 = vector.load %arg6[%c0_38, %c16_39] : memref<8x32xf32, #tpu.memory_space<vmem>>, vector<8x16xf32>
    tpu.vector_store %arg6[%c0_38, %c16_39], %89 {strides = array<i32>} : memref<8x32xf32, #tpu.memory_space<vmem>>, vector<8x16xf32>,
    %c0_40 = arith.constant 0 : index
    %c0_41 = arith.constant 0 : index
    %91 = vector.load %arg6[%c0_40, %c0_41] : memref<8x32xf32, #tpu.memory_space<vmem>>, vector<8x32xf32>
    %92 = arith.truncf %91 : vector<8x32xf32> to vector<8x32xbf16>
    %cst_42 = arith.constant dense<0.000000e+00> : vector<8x32xf32>
    %93 = tpu.matmul %92, %1, %cst_42 {dimension_numbers = #tpu.dot_dimension_numbers<[1], [0], [0], [1], [0, 0, 1, 1], [], []>} : vector<8x32xbf16>, vector<32x32xbf16>, vector<8x32xf32> -> vector<8x32xf32>
    %94 = arith.addf %20, %93 : vector<8x32xf32>
    %95 = vector.broadcast %8 : vector<1x32xf32> to vector<8x32xf32>
    %96 = arith.addf %94, %95 : vector<8x32xf32>
    %cst_43 = arith.constant dense<0.000000e+00> : vector<8xf32>
    %97 = vector.multi_reduction <add>, %96, %cst_43 [1] : vector<8x32xf32> to vector<8xf32>
    %98 = vector.shape_cast %97 : vector<8xf32> to vector<8x1xf32>
    %cst_44 = arith.constant 3.200000e+01 : f32
    %99 = vector.broadcast %cst_44 : f32 to vector<8x1xf32>
    %100 = arith.divf %98, %99 : vector<8x1xf32>
    %101 = vector.broadcast %100 : vector<8x1xf32> to vector<8x32xf32>
    %102 = arith.subf %96, %101 : vector<8x32xf32>
    %103 = arith.mulf %102, %102 : vector<8x32xf32>
    %cst_45 = arith.constant dense<0.000000e+00> : vector<8xf32>
    %104 = vector.multi_reduction <add>, %103, %cst_45 [1] : vector<8x32xf32> to vector<8xf32>
    %105 = vector.shape_cast %104 : vector<8xf32> to vector<8x1xf32>
    %cst_46 = arith.constant 3.200000e+01 : f32
    %106 = vector.broadcast %cst_46 : f32 to vector<8x1xf32>
    %107 = arith.divf %105, %106 : vector<8x1xf32>
    %108 = vector.broadcast %100 : vector<8x1xf32> to vector<8x32xf32>
    %109 = arith.subf %96, %108 : vector<8x32xf32>
    %cst_47 = arith.constant 9.99999997E-7 : f32
    %110 = vector.broadcast %cst_47 : f32 to vector<8x1xf32>
    %111 = arith.addf %107, %110 : vector<8x1xf32>
    %112 = math.rsqrt %111 : vector<8x1xf32>
    %113 = vector.broadcast %112 : vector<8x1xf32> to vector<8x32xf32>
    %114 = arith.mulf %109, %113 : vector<8x32xf32>
    %115 = vector.broadcast %13 : vector<1x32xf32> to vector<8x32xf32>
    %116 = arith.mulf %114, %115 : vector<8x32xf32>
    %117 = vector.broadcast %14 : vector<1x32xf32> to vector<8x32xf32>
    %118 = arith.addf %116, %117 : vector<8x32xf32>
    %119 = arith.truncf %118 : vector<8x32xf32> to vector<8x32xbf16>
    %cst_48 = arith.constant dense<0.000000e+00> : vector<8x128xf32>
    %120 = tpu.matmul %119, %2, %cst_48 {dimension_numbers = #tpu.dot_dimension_numbers<[1], [0], [0], [1], [0, 0, 1, 1], [], []>} : vector<8x32xbf16>, vector<32x128xbf16>, vector<8x128xf32> -> vector<8x128xf32>
    %121 = vector.broadcast %9 : vector<1x128xf32> to vector<8x128xf32>
    %122 = arith.addf %120, %121 : vector<8x128xf32>
    %123 = arith.mulf %122, %122 : vector<8x128xf32>
    %124 = arith.mulf %122, %123 : vector<8x128xf32>
    %cst_49 = arith.constant 4.471500e-02 : f32
    %125 = vector.broadcast %cst_49 : f32 to vector<8x128xf32>
    %126 = arith.mulf %125, %124 : vector<8x128xf32>
    %127 = arith.addf %122, %126 : vector<8x128xf32>
    %cst_50 = arith.constant 0.797884583 : f32
    %128 = vector.broadcast %cst_50 : f32 to vector<8x128xf32>
    %129 = arith.mulf %128, %127 : vector<8x128xf32>
    %130 = math.tanh %129 : vector<8x128xf32>
    %cst_51 = arith.constant 1.000000e+00 : f32
    %131 = vector.broadcast %cst_51 : f32 to vector<8x128xf32>
    %132 = arith.addf %131, %130 : vector<8x128xf32>
    %cst_52 = arith.constant 5.000000e-01 : f32
    %133 = vector.broadcast %cst_52 : f32 to vector<8x128xf32>
    %134 = arith.mulf %133, %132 : vector<8x128xf32>
    %135 = arith.mulf %122, %134 : vector<8x128xf32>
    %136 = arith.truncf %135 : vector<8x128xf32> to vector<8x128xbf16>
    %cst_53 = arith.constant dense<0.000000e+00> : vector<8x32xf32>
    %137 = tpu.matmul %136, %4, %cst_53 {dimension_numbers = #tpu.dot_dimension_numbers<[1], [0], [0], [1], [0, 0, 1, 1], [], []>} : vector<8x128xbf16>, vector<128x32xbf16>, vector<8x32xf32> -> vector<8x32xf32>
    %138 = arith.addf %96, %137 : vector<8x32xf32>
    %139 = vector.broadcast %10 : vector<1x32xf32> to vector<8x32xf32>
    %140 = arith.addf %138, %139 : vector<8x32xf32>
    %cst_54 = arith.constant dense<0.000000e+00> : vector<8xf32>
    %141 = vector.multi_reduction <add>, %140, %cst_54 [1] : vector<8x32xf32> to vector<8xf32>
    %142 = vector.shape_cast %141 : vector<8xf32> to vector<8x1xf32>
    %cst_55 = arith.constant 3.200000e+01 : f32
    %143 = vector.broadcast %cst_55 : f32 to vector<8x1xf32>
    %144 = arith.divf %142, %143 : vector<8x1xf32>
    %145 = vector.broadcast %144 : vector<8x1xf32> to vector<8x32xf32>
    %146 = arith.subf %140, %145 : vector<8x32xf32>
    %147 = arith.mulf %146, %146 : vector<8x32xf32>
    %cst_56 = arith.constant dense<0.000000e+00> : vector<8xf32>
    %148 = vector.multi_reduction <add>, %147, %cst_56 [1] : vector<8x32xf32> to vector<8xf32>
    %149 = vector.shape_cast %148 : vector<8xf32> to vector<8x1xf32>
    %cst_57 = arith.constant 3.200000e+01 : f32
    %150 = vector.broadcast %cst_57 : f32 to vector<8x1xf32>
    %151 = arith.divf %149, %150 : vector<8x1xf32>
    %152 = vector.broadcast %144 : vector<8x1xf32> to vector<8x32xf32>
    %153 = arith.subf %140, %152 : vector<8x32xf32>
    %cst_58 = arith.constant 9.99999997E-7 : f32
    %154 = vector.broadcast %cst_58 : f32 to vector<8x1xf32>
    %155 = arith.addf %151, %154 : vector<8x1xf32>
    %156 = math.rsqrt %155 : vector<8x1xf32>
    %157 = vector.broadcast %156 : vector<8x1xf32> to vector<8x32xf32>
    %158 = arith.mulf %153, %157 : vector<8x32xf32>
    %159 = vector.broadcast %15 : vector<1x32xf32> to vector<8x32xf32>
    %160 = arith.mulf %158, %159 : vector<8x32xf32>
    %161 = vector.broadcast %16 : vector<1x32xf32> to vector<8x32xf32>
    %162 = arith.addf %160, %161 : vector<8x32xf32>
    %c0_59 = arith.constant 0 : index
    %c0_60 = arith.constant 0 : index
    %c0_61 = arith.constant 0 : index
    %163 = vector.load %arg5[%c0_59, %c0_60, %c0_61] : memref<1x8x32xf32, #tpu.memory_space<vmem>>, vector<1x8x32xf32>
    %164 = vector.shape_cast %163 : vector<1x8x32xf32> to vector<8x32xf32>
    %165 = vector.shape_cast %162 : vector<8x32xf32> to vector<1x8x32xf32>
    tpu.vector_store %arg5[%c0_59, %c0_60, %c0_61], %165 {strides = array<i32>} : memref<1x8x32xf32, #tpu.memory_space<vmem>>, vector<1x8x32xf32>,
    return
  }
  func.func @transform_0(%arg0: i32) -> (i32, i32, i32) {
    %c0_i32 = arith.constant 0 : i32
    %c0_i32_0 = arith.constant 0 : i32
    %c0_i32_1 = arith.constant 0 : i32
    return %arg0, %c0_i32, %c0_i32_0 : i32, i32, i32
  }
  func.func @transform_1(%arg0: i32) -> (i32, i32) {
    %c0_i32 = arith.constant 0 : i32
    %c0_i32_0 = arith.constant 0 : i32
    %c0_i32_1 = arith.constant 0 : i32
    return %c0_i32, %c0_i32_0 : i32, i32
  }
  func.func @transform_2(%arg0: i32) -> (i32, i32) {
    %c0_i32 = arith.constant 0 : i32
    %c0_i32_0 = arith.constant 0 : i32
    %c0_i32_1 = arith.constant 0 : i32
    return %c0_i32, %c0_i32_0 : i32, i32
  }
  func.func @transform_3(%arg0: i32) -> (i32, i32) {
    %c0_i32 = arith.constant 0 : i32
    %c0_i32_0 = arith.constant 0 : i32
    %c0_i32_1 = arith.constant 0 : i32
    return %c0_i32, %c0_i32_0 : i32, i32
  }
  func.func @transform_4(%arg0: i32) -> (i32, i32, i32) {
    %c0_i32 = arith.constant 0 : i32
    %c0_i32_0 = arith.constant 0 : i32
    %c0_i32_1 = arith.constant 0 : i32
    return %arg0, %c0_i32, %c0_i32_0 : i32, i32, i32
  }
}

</mosaic_0001>

<bundles_post_ra>
// kernel: radio_forward.1
= control target key start
LH: loop header
LB: loop body
LE: loop exit
PB: predicated region body
PF: predicated region fallthrough
CT: control target
= control target key end

     0   :  { %s1015_s15 = smov 0   ;;  %s1206_s0 = inlined_call_operand.vmem [shape: bf16[2,8,192], index: 0, kind: input, shape index: {}]   ;;  %s1207_s1 = inlined_call_operand.vmem [shape: bf16[32,256], index: 1, kind: input, shape index: {}]   ;;  %s1208_s2 = inlined_call_operand.vmem [shape: bf16[320,32], index: 2, kind: input, shape index: {}]   ;;  %s1209_s3 = inlined_call_operand.vmem [shape: f32[24,128], index: 3, kind: input, shape index: {}]   ;;  %s1210_s4 = inlined_call_operand.vmem [shape: f32[2,8,32], index: 4, kind: output, shape index: {}]  }
   0x1 LB: > { %s790_s16 = sadd.s32 4294967295, %s980_s15   ;;  %p794_p0 = scmp.ge.s32.totalorder %s980_s15, 1  ;;  %s980_s15 = sphi %s1015_s15, %s14_s15  }
   0x2   : > { %p162_p1 = scmp.lt.s32.totalorder %s980_s15, 3 }
   0x4   : > { %p163_p2 = pnand %p794_p0, %p162_p1 }
   0x5   : > { %p187_p3 = scmp.lt.s32.totalorder (!%p163_p2), %s790_s16, 1  ;;  %s983_s12 = smov (!%p163_p2), 112  }
   0x6   : > { %166 = sbr.rel (%p163_p2) target bundleno = 2323 (0x913), region = 36  ;;  %s984_s13 = smov (!%p163_p2), 96  }
   0x7   : > { %s985_s14 = smov (!%p163_p2), 80   ;;  %s986_s19 = smov (!%p163_p2), 48  }
   0x8   : > { %s987_s20 = smov (!%p163_p2), 64   ;;  %s988_s21 = smov (!%p163_p2), 32  }
   0x9   : > { %s989_s22 = smov (!%p163_p2), 16  }
   0xb   : > { %v916_v0 = vld [vmem:[%s1208_s2 + $0x38] sm:$0xff]  ;;  %v915_v2 = vld [vmem:[%s1208_s2 + $0x30] sm:$0xff]  ;;  %s1212_s16 = smov (!%p187_p3, %s790_s16), 1  ;;  %v914_v4 = vld [vmem:[%s1208_s2 + $0x28] sm:$0xff]  ;;  %vm336_vm0 = vcmask 523264   ;;  %vm366_vm1 = vcmask 261120  }
   0xc   : > { %v920_v1 = vld [vmem:[%s1208_s2 + $0x58] sm:$0xff]  ;;  %340 = vmatpush.bf16.msra.mxu0 %v916_v0  ;;  %v919_v3 = vld [vmem:[%s1208_s2 + $0x50] sm:$0xff]  ;;  %s904_s27 = sshll.u32 %s1212_s16, 3  ;;  %v918_v5 = vld [vmem:[%s1208_s2 + $0x48] sm:$0xff]  ;;  %v982_v25 = vmov 32.0   ;;  %vm435_vm6 = vcmask 130048  }
   0xd   : > { %357 = vmatpush.bf16.msra.mxu1 %v920_v1  ;;  %s191_s6 = scalar_lea.vmem %s1206_s0, %s904_s27  ;;  %v913_v7 = vld [vmem:[%s1208_s2 + $0x20] sm:$0xff]  ;;  %v912_v10 = vld [vmem:[%s1208_s2 + $0x18] sm:$0xff]  ;;  %v911_v12 = vld [vmem:[%s1208_s2 + $0x10] sm:$0xff]  ;;  %956 = vrcp.f32 %v982_v25  ;;  %vm455_vm7 = vcmask 64512   ;;  %vm473_vm8 = vcmask 1043456   ;;  %vm551_vm9 = vcmask 261248   ;;  %s195_s17 = scalar_lea.vmem %s1210_s4, %s904_s27 }
   0xe   : > { %v257_v6 = vld [vmem:[%s191_s6] sm:$0xff]  ;;  %v910_v13 = vld [vmem:[%s1208_s2 + $0x8] sm:$0xff]  ;;  %v853_v37 = vld [vmem:[%s1207_s1 + $0x10] sm:$0xf] }
   0xf   : > { %v260_v8 = vunpack.c.h.b16 %v257_v6  ;;  %v917_v9 = vld [vmem:[%s1208_s2 + $0x40] sm:$0xff]  ;;  %v259_v14 = vunpack.c.l.b16 %v257_v6  ;;  %v906_v38 = vld [vmem:[%s1207_s1 + $0x14] sm:$0xf0]  ;;  %v905_v41 = vld [vmem:[%s1207_s1 + $0x4] sm:$0xf0] }
  0x10   : > { %341 = vmatpush.bf16.msra.mxu0 %v915_v2  ;;  %v909_v15 = vld [vmem:[%s1208_s2] sm:$0xff]  ;;  %v1085_v39 = vor.u32 %v906_v38, %v853_v37  ;;  %v945_v52 = vld [vmem:[%s1209_s3 + $0xd] ss:$0 sm:$0xff]  ;;  %v946_v55 = vld [vmem:[%s1209_s3 + $0xe] ss:$0 sm:$0xff] }
  0x11   : > { %358 = vmatpush.bf16.msra.mxu1 %v919_v3  ;;  %v262_v11 = vpack.c.b16 %v260_v8, %v260_v8  ;;  %v261_v16 = vpack.c.b16 %v259_v14, %v259_v14  ;;  %v245_v19 = vld [vmem:[%s1209_s3] sm:$0xff]  ;;  %v947_v59 = vld [vmem:[%s1209_s3 + $0x9] ss:$0 sm:$0xff] }
  0x12   : > { %v849_v40 = vld [vmem:[%s1207_s1] sm:$0xf]  ;;  %423 = vmatpush.bf16.msra.mxu2 %v1085_v39 }
  0x13   : > { %v957_v26 = vpop.eup %956  ;;  %v1094_v42 = vor.u32 %v905_v41, %v849_v40 }
  0x14   : > { %342 = vmatpush.bf16.msra.mxu0 %v914_v4  ;;  %v371_v27 = vmul.f32 32.0, %v957_v26  ;;  %vm375_vm2 = vweird.f32 %v957_v26 }
  0x15   : > { %359 = vmatpush.bf16.msra.mxu1 %v918_v5  ;;  %v948_v5 = vld [vmem:[%s1209_s3 + $0x8] ss:$0 sm:$0xff] }
  0x16   : > { %v372_v28 = vsub.f32 1.0, %v371_v27  ;;  %424 = vmatpush.bf16.msra.mxu2 %v1094_v42 }
  0x18   : > { %343 = vmatpush.bf16.msra.mxu0 %v913_v7  ;;  %v373_v29 = vmul.f32 %v957_v26, %v372_v28 }
  0x19   : > { %360 = vmatpush.bf16.msra.mxu1 %v917_v9 }
  0x1a   : > { %v374_v30 = vadd.f32 %v957_v26, %v373_v29 }
  0x1c   : > { %344 = vmatpush.bf16.msra.mxu0 %v912_v10  ;;  %846 = vmatmul.msk.bf16.vlgmr.msra.gmra.mxu1 %vm336_vm0, %v262_v11  ;;  %v1074_v31 = vsel %vm375_vm2, %v957_v26, %v374_v30 }
  0x20   : > { %345 = vmatpush.bf16.msra.mxu0 %v911_v12 }
  0x24   : > { %346 = vmatpush.bf16.msra.mxu0 %v910_v13 }
  0x28   : > { %347 = vmatpush.bf16.msra.mxu0 %v909_v15 }
  0x2b   : > { %348 = vmatmul.bf16.vlgmr.msra.gmra.mxu0 %v261_v16 }
  0x99   : > { %v362_v17 = vpop.f32.mrf.mxu1 }
  0xa1   : > { %v364_v18 = vpop.f32.mrf.mxu1 }
  0xa8   : > { %v349_v20 = vpop.f32.mrf.mxu0 }
  0xa9   : > { %v350_v21 = vadd.f32 %v349_v20, %v245_v19 }
  0xab   : > { %v1070_v22 = vadd.f32 %v362_v17, %v350_v21 }
  0xad   : > { %v367_v23 = vsel %vm366_vm1, %v1070_v22, 0.0 }
  0xae   : > { %368 = vadd.xlane.f32.xlu0 %v367_v23 }
  0xb0   : > { %v351_v24 = vpop.f32.mrf.mxu0 }
 0x121   : > { %v369_v32 = vpop.xlane.xlu0 %368 }
 0x122   : > { %v377_v33 = vmul.f32 %v1074_v31, %v369_v32 }
 0x124   : > { %v378_v34 = vsub.f32 %v1070_v22, %v377_v33 }
 0x126   : > { %v379_v35 = vmul.f32 %v378_v34, %v378_v34 }
 0x128   : > { %v380_v36 = vsel %vm366_vm1, %v379_v35, 0.0 }
 0x129   : > { %381 = vadd.xlane.f32.xlu0 %v380_v36 }
 0x19c   : > { %v382_v43 = vpop.xlane.xlu0 %381 }
 0x19d   : > { %v383_v44 = vmul.f32 %v382_v43, %v1074_v31 }
 0x19f   : > { %v384_v45 = vadd.f32 1e-06, %v383_v44 }
 0x1a1   : > { %958 = vrsqrt.f32 %v384_v45  ;;  %vm391_vm4 = vweird.f32 %v384_v45 }
 0x1a7   : > { %v959_v46 = vpop.eup %958 }
 0x1a8   : > { %v386_v47 = vmul.f32 %v959_v46, %v384_v45  ;;  %vm392_vm3 = vweird.f32 %v959_v46 }
 0x1a9   : > { %vm393_vm5 = vmor %vm391_vm4, %vm392_vm3 }
 0x1aa   : > { %v387_v48 = vmul.f32 %v959_v46, %v386_v47 }
 0x1ac   : > { %v388_v49 = vmul.f32 0.5, %v387_v48 }
 0x1ae   : > { %v389_v50 = vsub.f32 1.5, %v388_v49 }
 0x1b0   : > { %v390_v51 = vmul.f32 %v959_v46, %v389_v50 }
 0x1b2   : > { %v394_v53 = vsel %vm393_vm5, %v959_v46, %v390_v51 }
 0x1b3   : > { %v395_v54 = vmul.f32 %v394_v53, %v378_v34 }
 0x1b5   : > { %v397_v56 = vmul.f32 %v945_v52, %v395_v54 }
 0x1b7   : > { %v399_v57 = vadd.f32 %v946_v55, %v397_v56 }
 0x1b9   : > { %v400_v58 = vpack.c.bf16 %v399_v57, %v399_v57 }
 0x1bb   : > { %855 = vmatmul.msk.bf16.vlgmr.msra.gmra.mxu2 %vm366_vm1, %v400_v58  ;;  %v908_v58 = vld [vmem:[%s1207_s1 + $0x18] sm:$0xf0] }
 0x23e   : > { %v426_v60 = vpop.f32.mrf.mxu2 }
 0x23f   : > { %v427_v61 = vadd.f32 %v947_v59, %v426_v60  ;;  %v863_v60 = vld [vmem:[%s1207_s1 + $0x4] sm:$0xf] }
 0x241   : > { %v430_v62 = vpack.c.bf16 %v427_v61, %v427_v61  ;;  %v907_v61 = vld [vmem:[%s1207_s1 + $0x8] sm:$0xf0] }
 0x243   : > { %491 = vrot.lane.b32.xlu2 %v430_v62, %s983_s12  ;;  %433 = vrot.lane.b32.xlu1 %v430_v62, %s984_s13 }
 0x246   : > { %v428_v63 = vpop.f32.mrf.mxu2 }
 0x247   : > { %v928_v63 = vld [vmem:[%s1208_s2 + $0x98] sm:$0xff] }
 0x248   : > { %694 = vmatpush.bf16.msrb.mxu0 %v928_v63 }
 0x24b   : > { %493 = vrot.lane.b32.xlu1 %v430_v62, %s985_s14 }
 0x29d   : > { %v492_v4 = vpop.permute.xlu2 %491 }
 0x2b5   : > { %v434_v0 = vpop.permute.xlu1 %433 }
 0x2b6   : > { %v440_v1 = vsel %vm435_vm6, %v434_v0, 0 }
 0x2b7   : > { %449 = vmatpush.bf16.xpose.msra.mxu3 %v440_v1 }
 0x2bd   : > { %v494_v2 = vpop.permute.xlu1 %493 }
 0x2be   : > { %856 = vmatmul.msk.bf16.vlgmr.msra.gmra.mxu3 %vm435_vm6, %v430_v62  ;;  %v499_v3 = vsel %vm435_vm6, %v494_v2, 0 }
 0x2bf   : > { %508 = vmatpush.bf16.xpose.msrb.mxu3 %v499_v3 }
 0x2ce   : > { %858 = vmatmul.msk.bf16.vlgmr.msrb.gmra.mxu3 %vm435_vm6, %v492_v4 }
 0x341   : > { %v451_v6 = vpop.f32.mrf.mxu3 }
 0x342   : > { %v452_v7 = vadd.f32 %v948_v5, %v451_v6 }
 0x344   : > { %v456_v8 = vsel %vm455_vm7, %v452_v7, -inf }
 0x345   : > { %457 = vmax.xlane.f32.xlu0 %v456_v8 }
 0x349   : > { %v453_v9 = vpop.f32.mrf.mxu3 }
 0x34a   : > { %v950_v9 = vld [vmem:[%s1209_s3 + $0xf] ss:$0 sm:$0xff] }
 0x351   : > { %v510_v10 = vpop.f32.mrf.mxu3 }
 0x352   : > { %v511_v11 = vadd.f32 %v948_v5, %v510_v10 }
 0x354   : > { %v514_v12 = vsel %vm455_vm7, %v511_v11, -inf }
 0x355   : > { %515 = vmax.xlane.f32.xlu2 %v514_v12  ;;  %v951_v12 = vld [vmem:[%s1209_s3 + $0x10] ss:$0 sm:$0xff] }
 0x359   : > { %526 = vrot.lane.b32.xlu0 %v430_v62, %s986_s19  ;;  %v512_v13 = vpop.f32.mrf.mxu3 }
 0x36d   : > { %468 = vrot.lane.b32.xlu2 %v430_v62, %s987_s20  ;;  %v864_v62 = vor.u32 %v907_v61, %v863_v60 }
 0x375   : > { %557 = vrot.lane.b32.xlu2 %v1085_v39, %s988_s21  ;;  %v949_v39 = vld [vmem:[%s1209_s3 + $0xa] ss:$0 sm:$0xff] }
 0x37d   : > { %555 = vrot.lane.b32.xlu2 %v1094_v42, %s988_s21 }
 0x3b8   : > { %v458_v14 = vpop.xlane.xlu0 %457 }
 0x3b9   : > { %v459_v15 = vsub.f32 %v452_v7, %v458_v14 }
 0x3bb   : > { %v460_v16 = vmul.f32 1.442695, %v459_v15 }
 0x3bd   : > { %960 = vpow2.f32 %v460_v16  ;;  %v927_v16 = vld [vmem:[%s1208_s2 + $0x90] sm:$0xff] }
 0x3be   : > { %695 = vmatpush.bf16.msrb.mxu0 %v927_v16 }
 0x3c3   : > { %v961_v17 = vpop.eup %960 }
 0x3c4   : > { %v462_v18 = vsel %vm455_vm7, %v961_v17, 0.0 }
 0x3c5   : > { %463 = vadd.xlane.f32.xlu0 %v462_v18  ;;  %v925_v18 = vld [vmem:[%s1208_s2 + $0x80] sm:$0xff] }
 0x3c8   : > { %v516_v19 = vpop.xlane.xlu2 %515 }
 0x3c9   : > { %v517_v20 = vsub.f32 %v511_v11, %v516_v19  ;;  %v924_v19 = vld [vmem:[%s1208_s2 + $0x78] sm:$0xff] }
 0x3cb   : > { %v518_v21 = vmul.f32 1.442695, %v517_v20  ;;  %v527_v23 = vpop.permute.xlu0 %526  ;;  %v923_v20 = vld [vmem:[%s1208_s2 + $0x70] sm:$0xff] }
 0x3cc   : > { %v532_v24 = vsel %vm473_vm8, %v527_v23, 0  ;;  %v921_v23 = vld [vmem:[%s1208_s2 + $0x60] sm:$0xff] }
 0x3cd   : > { %962 = vpow2.f32 %v518_v21  ;;  %541 = vmatpush.bf16.msrb.mxu1 %v532_v24  ;;  %v922_v21 = vld [vmem:[%s1208_s2 + $0x68] sm:$0xff] }
 0x3ce   : > { %v952_v24 = vld [vmem:[%s1209_s3 + $0xb] ss:$0 sm:$0xff] }
 0x3d0   : > { %v469_v25 = vpop.permute.xlu2 %468 }
 0x3d1   : > { %v475_v26 = vsel %vm473_vm8, %v469_v25, 0 }
 0x3d2   : > { %484 = vmatpush.bf16.msrb.mxu2 %v475_v26 }
 0x3d3   : > { %v963_v27 = vpop.eup %962 }
 0x3d4   : > { %v520_v28 = vsel %vm455_vm7, %v963_v27, 0.0 }
 0x3d5   : > { %521 = vadd.xlane.f32.xlu1 %v520_v28 }
 0x3d8   : > { %v558_v38 = vpop.permute.xlu2 %557 }
 0x3d9   : > { %570 = vmatpush.bf16.msra.mxu2 %v558_v38 }
 0x3e0   : > { %v556_v45 = vpop.permute.xlu2 %555 }
 0x3e1   : > { %571 = vmatpush.bf16.msra.mxu2 %v556_v45 }
 0x438   : > { %v464_v29 = vpop.xlane.xlu0 %463 }
 0x439   : > { %964 = vrcp.f32 %v464_v29 }
 0x43f   : > { %v965_v30 = vpop.eup %964 }
 0x440   : > { %v466_v32 = vmul.f32 %v965_v30, %v961_v17  ;;  %v926_v17 = vld [vmem:[%s1208_s2 + $0x88] sm:$0xff] }
 0x441   : > { %696 = vmatpush.bf16.msrb.mxu0 %v926_v17 }
 0x442   : > { %v467_v33 = vpack.c.bf16 %v466_v32, %v466_v32 }
 0x444   : > { %857 = vmatmul.msk.bf16.vlgmr.msrb.gmra.mxu2 %vm455_vm7, %v467_v33 }
 0x445   : > { %697 = vmatpush.bf16.msrb.mxu0 %v925_v18 }
 0x448   : > { %v522_v34 = vpop.xlane.xlu1 %521 }
 0x449   : > { %966 = vrcp.f32 %v522_v34  ;;  %698 = vmatpush.bf16.msrb.mxu0 %v924_v19 }
 0x44d   : > { %699 = vmatpush.bf16.msrb.mxu0 %v923_v20 }
 0x44f   : > { %v967_v35 = vpop.eup %966 }
 0x450   : > { %v524_v36 = vmul.f32 %v967_v35, %v963_v27 }
 0x451   : > { %700 = vmatpush.bf16.msrb.mxu0 %v922_v21 }
 0x452   : > { %v525_v37 = vpack.c.bf16 %v524_v36, %v524_v36 }
 0x454   : > { %859 = vmatmul.msk.bf16.vlgmr.msrb.gmra.mxu1 %vm455_vm7, %v525_v37 }
 0x455   : > { %701 = vmatpush.bf16.msrb.mxu0 %v921_v23 }
 0x4c7   : > { %v486_v40 = vpop.f32.mrf.mxu2 }
 0x4c8   : > { %490 = vst.msk [vmem:[#allocation2] sm:$0xff] %vm435_vm6, %v486_v40  ;;  %v953_v40 = vld [vmem:[%s1209_s3 + $0xc] ss:$0 sm:$0xff] }
 0x4cf   : > { %v488_v41 = vpop.f32.mrf.mxu2 }
 0x4d1   : > { %v543_v43 = vpop.f32.mrf.mxu1 }
 0x4d2   : > { %548 = vrot.lane.b32.xlu1 %v543_v43, %s989_s22 }
 0x4d9   : > { %v545_v44 = vpop.f32.mrf.mxu1 }
 0x544   : > { %v549_v46 = vpop.permute.xlu1 %548 }
 0x545   : > { %552 = vst.msk [vmem:[#allocation2] sm:$0xff] %vm551_vm9, %v549_v46 }
 0x54c   : > { %v553_v47 = vld [vmem:[#allocation2] sm:$0xff] }
 0x54d   : > { %v554_v48 = vpack.c.bf16 %v553_v47, %v553_v47 }
 0x54f   : > { %860 = vmatmul.msk.bf16.vlgmr.msra.gmra.mxu2 %vm366_vm1, %v554_v48 }
 0x5d2   : > { %v573_v42 = vpop.f32.mrf.mxu2 }
 0x5d3   : > { %v577_v49 = vadd.f32 %v573_v42, %v1070_v22  ;;  %v867_v22 = vld [vmem:[%s1207_s1 + $0x14] sm:$0xf] }
 0x5d4   : > { %v868_v59 = vor.u32 %v908_v58, %v867_v22  ;;  %v954_v58 = vld [vmem:[%s1209_s3 + $0x11] ss:$0 sm:$0xff] }
 0x5d5   : > { %v1129_v50 = vadd.f32 %v949_v39, %v577_v49 }
 0x5d6   : > { %629 = vmatpush.bf16.msra.mxu3 %v868_v59 }
 0x5d7   : > { %v580_v51 = vsel %vm366_vm1, %v1129_v50, 0.0 }
 0x5d8   : > { %581 = vadd.xlane.f32.xlu1 %v580_v51 }
 0x5da   : > { %v575_v52 = vpop.f32.mrf.mxu2  ;;  %630 = vmatpush.bf16.msra.mxu3 %v864_v62 }
 0x64b   : > { %v582_v53 = vpop.xlane.xlu1 %581 }
 0x64c   : > { %v583_v54 = vmul.f32 %v582_v53, %v1074_v31 }
 0x64e   : > { %v584_v55 = vsub.f32 %v1129_v50, %v583_v54 }
 0x650   : > { %v585_v56 = vmul.f32 %v584_v55, %v584_v55 }
 0x652   : > { %v586_v57 = vsel %vm366_vm1, %v585_v56, 0.0 }
 0x653   : > { %587 = vadd.xlane.f32.xlu0 %v586_v57 }
 0x6c6   : > { %v588_v0 = vpop.xlane.xlu0 %587 }
 0x6c7   : > { %v589_v1 = vmul.f32 %v588_v0, %v1074_v31 }
 0x6c9   : > { %v590_v2 = vadd.f32 1e-06, %v589_v1 }
 0x6cb   : > { %968 = vrsqrt.f32 %v590_v2  ;;  %vm597_vm11 = vweird.f32 %v590_v2 }
 0x6d1   : > { %v969_v3 = vpop.eup %968 }
 0x6d2   : > { %v592_v4 = vmul.f32 %v969_v3, %v590_v2  ;;  %vm598_vm10 = vweird.f32 %v969_v3 }
 0x6d3   : > { %vm599_vm12 = vmor %vm597_vm11, %vm598_vm10 }
 0x6d4   : > { %v593_v5 = vmul.f32 %v969_v3, %v592_v4 }
 0x6d6   : > { %v594_v6 = vmul.f32 0.5, %v593_v5 }
 0x6d8   : > { %v595_v7 = vsub.f32 1.5, %v594_v6 }
 0x6da   : > { %v596_v8 = vmul.f32 %v969_v3, %v595_v7 }
 0x6dc   : > { %v600_v10 = vsel %vm599_vm12, %v969_v3, %v596_v8 }
 0x6dd   : > { %v601_v11 = vmul.f32 %v600_v10, %v584_v55 }
 0x6df   : > { %v603_v13 = vmul.f32 %v950_v9, %v601_v11 }
 0x6e1   : > { %v605_v14 = vadd.f32 %v951_v12, %v603_v13 }
 0x6e3   : > { %v606_v15 = vpack.c.bf16 %v605_v14, %v605_v14 }
 0x6e5   : > { %869 = vmatmul.msk.bf16.vlgmr.msra.gmra.mxu3 %vm366_vm1, %v606_v15 }
 0x768   : > { %v632_v25 = vpop.f32.mrf.mxu3 }
 0x769   : > { %v633_v26 = vadd.f32 %v952_v24, %v632_v25 }
 0x76b   : > { %v636_v27 = vmul.f32 %v633_v26, %v633_v26 }
 0x76d   : > { %v637_v28 = vmul.f32 %v636_v27, %v633_v26 }
 0x76f   : > { %v638_v29 = vmul.f32 0.044715, %v637_v28 }
 0x770   : > { %v634_v30 = vpop.f32.mrf.mxu3 }
 0x771   : > { %v639_v32 = vadd.f32 %v638_v29, %v633_v26 }
 0x773   : > { %v640_v33 = vmul.f32 0.7978846, %v639_v32 }
 0x775   : > { %970 = vtanh.f32 %v640_v33 }
 0x77b   : > { %v971_v34 = vpop.eup %970 }
 0x77c   : > { %v642_v35 = vadd.f32 1.0, %v971_v34 }
 0x77e   : > { %v643_v36 = vmul.f32 0.5, %v642_v35 }
 0x780   : > { %v644_v37 = vmul.f32 %v643_v36, %v633_v26 }
 0x782   : > { %v645_v38 = vpack.c.bf16 %v644_v37, %v644_v37 }
 0x784   : > { %702 = vmatmul.bf16.vlgmr.msrb.gmra.mxu0 %v645_v38 }
 0x801   : > { %v703_v41 = vpop.f32.mrf.mxu0 }
 0x802   : > { %v707_v43 = vadd.f32 %v703_v41, %v1129_v50 }
 0x804   : > { %v709_v44 = vadd.f32 %v953_v40, %v707_v43 }
 0x806   : > { %v710_v45 = vsel %vm366_vm1, %v709_v44, 0.0 }
 0x807   : > { %711 = vadd.xlane.f32.xlu2 %v710_v45 }
 0x809   : > { %v705_v46 = vpop.f32.mrf.mxu0 }
 0x87a   : > { %v712_v47 = vpop.xlane.xlu2 %711 }
 0x87b   : > { %v713_v48 = vmul.f32 %v712_v47, %v1074_v31 }
 0x87d   : > { %v714_v39 = vsub.f32 %v709_v44, %v713_v48 }
 0x87f   : > { %v715_v42 = vmul.f32 %v714_v39, %v714_v39 }
 0x881   : > { %v716_v49 = vsel %vm366_vm1, %v715_v42, 0.0 }
 0x882   : > { %717 = vadd.xlane.f32.xlu0 %v716_v49 }
 0x8f5   : > { %v718_v51 = vpop.xlane.xlu0 %717 }
 0x8f6   : > { %v719_v52 = vmul.f32 %v718_v51, %v1074_v31  ;;  %v955_v31 = vld [vmem:[%s1209_s3 + $0x12] ss:$0 sm:$0xff] }
 0x8f8   : > { %v720_v53 = vadd.f32 1e-06, %v719_v52 }
 0x8fa   : > { %972 = vrsqrt.f32 %v720_v53  ;;  %vm727_vm14 = vweird.f32 %v720_v53 }
 0x900   : > { %v973_v50 = vpop.eup %972 }
 0x901   : > { %v722_v54 = vmul.f32 %v973_v50, %v720_v53  ;;  %vm728_vm13 = vweird.f32 %v973_v50 }
 0x902   : > { %vm729_vm15 = vmor %vm727_vm14, %vm728_vm13 }
 0x903   : > { %v723_v55 = vmul.f32 %v973_v50, %v722_v54 }
 0x905   : > { %v724_v56 = vmul.f32 0.5, %v723_v55 }
 0x907   : > { %v725_v57 = vsub.f32 1.5, %v724_v56 }
 0x909   : > { %v726_v22 = vmul.f32 %v973_v50, %v725_v57 }
 0x90b   : > { %v730_v59 = vsel %vm729_vm15, %v973_v50, %v726_v22 }
 0x90c   : > { %v731_v60 = vmul.f32 %v730_v59, %v714_v39 }
 0x90e   : > { %v733_v61 = vmul.f32 %v954_v58, %v731_v60 }
 0x910   : > { %v735_v62 = vadd.f32 %v955_v31, %v733_v61 }
 0x912   : > { %736 = vst.msk [vmem:[%s195_s17] sm:$0xff] %vm366_vm1, %v735_v62 }
 0x913 PF: > { %s14_s15 = sadd.s32 1, %s980_s15  }
 0x914   : > { %p11_p4 = scmp.ge.s32.totalorder %s14_s15, 4  }
 0x916   :  { %13 = sbr.rel (!%p11_p4) target bundleno = 1 (0x1), region = 66 }

</bundles_post_ra>
